<compile_context>
chip_gen: v7x
topology: tpu7x:2x2x1
jax: 0.10.0
libtpu: 0.0.40
codegen_flags: <defaults>
</compile_context>

<pallas_src>
import jax
import jax.numpy as jnp
from jax.experimental import pallas as pl
from jax.experimental.pallas import tpu as pltpu


def make_location_encode(width, height):
    """jnp equivalent of torch.cat((ones, create_dx_dy_gradient(width, height)[0]), 0)."""
    # dx: varies along the last axis (values 1/height .. 1)
    dx = jnp.broadcast_to(
        (jnp.arange(1, height + 1, dtype=jnp.float32) / float(height))[None, :],
        (width, height),
    )
    # dy: varies along the first spatial axis (values 1/width .. 1)
    dy = jnp.broadcast_to(
        (jnp.arange(1, width + 1, dtype=jnp.float32) / float(width))[:, None],
        (width, height),
    )
    ones = jnp.ones((width, height), dtype=jnp.float32)
    return jnp.stack([ones, dx, dy], axis=0)  # (3, width, height)


def _sublane_pack(dtype):
    """Sublane packing multiple: 8 rows for 32-bit, 16 for bf16, 32 for int8/fp8."""
    return 8 * max(1, 4 // jnp.dtype(dtype).itemsize)


def _tpu_config():
    """(target output-block bytes, min grid steps, usable VMEM limit) per generation."""
    kind = ""
    try:
        kind = jax.devices()[0].device_kind.lower()
    except Exception:
        pass
    vmem_cap = None
    try:
        vmem_cap = int(pltpu.get_tpu_info().vmem_capacity_bytes)
    except Exception:
        vmem_cap = None
    is_v7 = ("v7" in kind) or (vmem_cap is not None and vmem_cap <= (64 << 20))
    if vmem_cap is None:
        vmem_cap = (64 << 20) if is_v7 else (128 << 20)
    target_bytes = (4 << 20) if is_v7 else (2 << 20)  # amortize ~0.35 us/step overhead
    min_steps = 4 if is_v7 else 2                     # >= 2 steps per v7x TensorCore
    vmem_usable = max(32 << 20, (vmem_cap * 3) // 4)  # ~48 MiB v7x, ~96 MiB v5e/v6e
    return target_bytes, min_steps, vmem_usable


def _pick_batch_block(n, row_out_bytes, dtype, target_bytes, min_steps):
    """Rows per grid step: a multiple of the dtype's sublane packing sized toward
    `target_bytes` of output per block; the cdiv grid masks a ragged last block.
    Small batches use a single full-extent block (block dim == array dim is legal)."""
    pack = _sublane_pack(dtype)
    if n <= pack:
        return n
    # Rows per ~target_bytes output block, aligned to the sublane packing.
    nb = max(pack, (target_bytes // max(row_out_bytes, 1)) // pack * pack)
    # Prefer >= min_steps grid steps (megacore sharding + DMA overlap) as long as
    # each block still carries >= target/4 bytes of output.
    if pl.cdiv(n, nb) < min_steps:
        nb_split = (pl.cdiv(n, min_steps) // pack) * pack
        if nb_split >= pack and nb_split * row_out_bytes >= target_bytes // 4:
            nb = nb_split
    if nb >= n:
        return n
    return int(nb)


def _concat_kernel(x_ref, scaled_ref, o_ref):
    # x_ref:      (nb, cin)        passthrough channels, flattened (lane-dense)
    # scaled_ref: (1,  cgrad)      precomputed locationEncode * locationBias
    # o_ref:      (nb, cin+cgrad)
    nb, cin = x_ref.shape
    cgrad = o_ref.shape[1] - cin

    # Passthrough copy (the dominant stream): full-width dense stores.
    o_ref[:, :cin] = x_ref[...]

    # Broadcast the scaled location-encode row over this block's batch rows,
    # streamed in sublane-packed row chunks so the live value stays a few vregs.
    row = scaled_ref[...].astype(o_ref.dtype)                   # (1, cgrad)
    pack = 8 * max(1, 4 // jnp.dtype(o_ref.dtype).itemsize)     # 8 f32 / 16 bf16 / 32 i8
    chunk = pack if nb > pack else nb
    tile = jnp.broadcast_to(row, (chunk, cgrad))
    full = (nb // chunk) * chunk
    for r0 in range(0, full, chunk):                            # static trip count
        o_ref[r0:r0 + chunk, cin:] = tile
    if full < nb:                                               # small-batch remainder
        o_ref[full:, cin:] = jnp.broadcast_to(row, (nb - full, cgrad))


def concated_gradient_forward(x, location_encode, location_bias, *,
                              min_pallas_out_bytes=256 << 10, batch_block=None):
    """x: (N, C, H, W); returns (N, C+3, H, W) with the same dtype as x.

    min_pallas_out_bytes: below this output size a fused XLA concat/broadcast is
    returned (pallas launch overhead dominates there). batch_block: optional manual
    rows-per-grid-step override (testing / tuning)."""
    n, c, h, w = x.shape
    hw = h * w
    cin = c * hw
    cgrad = 3 * hw
    cout = cin + cgrad
    itemsize = jnp.dtype(x.dtype).itemsize

    # Hoist the learnable scaling out of the kernel (one tiny elementwise product).
    scaled = (location_encode.astype(jnp.float32)
              * location_bias.astype(jnp.float32)).astype(x.dtype)

    if n * cout * itemsize < min_pallas_out_bytes:
        # Small-size fallback: fixed pallas_call cost dominates at this scale.
        return jnp.concatenate(
            [x, jnp.broadcast_to(scaled[None], (n, 3, h, w))], axis=1)

    target_bytes, min_steps, vmem_usable = _tpu_config()
    if batch_block is None:
        nb = _pick_batch_block(n, cout * itemsize, x.dtype, target_bytes, min_steps)
    else:
        nb = int(min(batch_block, n))
    grid = (pl.cdiv(n, nb),)

    # Lane-dense 2-D views (free reshapes of contiguous NCHW data).
    x2d = x.reshape(n, cin)
    scaled2d = scaled.reshape(1, cgrad)

    # VMEM budget: double-buffered in/out blocks + broadcast row + slack.
    vmem_need = 2 * nb * (cin + cout) * itemsize + 2 * cgrad * itemsize + (2 << 20)
    vmem_limit = int(min(max(vmem_need, 32 << 20), vmem_usable))

    cost = pl.CostEstimate(
        flops=0, transcendentals=0,
        bytes_accessed=int((n * cin + cgrad + n * cout) * itemsize))

    out2d = pl.pallas_call(
        _concat_kernel,
        out_shape=jax.ShapeDtypeStruct((n, cout), x.dtype),
        grid_spec=pltpu.PrefetchScalarGridSpec(
            num_scalar_prefetch=0,
            grid=grid,
            in_specs=[
                pl.BlockSpec((nb, cin), lambda i: (i, 0)),
                pl.BlockSpec((1, cgrad), lambda i: (0, 0)),
            ],
            out_specs=pl.BlockSpec((nb, cout), lambda i: (i, 0)),
        ),
        compiler_params=pltpu.CompilerParams(
            dimension_semantics=("parallel",),
            vmem_limit_bytes=vmem_limit,
        ),
        cost_estimate=cost,
    )(x2d, scaled2d)

    # Restore the NCHW view outside the kernel (layout plumbing only).
    return out2d.reshape(n, c + 3, h, w)


if __name__ == "__main__":
    # Module params: concated_gradient(width=16, height=16, learnable=True, gradient=True)
    width, height = 16, 16
    N, C = 2, 4

    key = jax.random.PRNGKey(0)
    kx, kb = jax.random.split(key)

    x = jax.random.normal(kx, (N, C, width, height), dtype=jnp.float32)
    location_encode = make_location_encode(width, height)                    # (3, W, H)
    location_bias = jax.random.normal(kb, (3, width, height), jnp.float32)   # Parameter init

    scaled = location_encode * location_bias
    ref = jnp.concatenate(
        [x, jnp.broadcast_to(scaled[None], (N, 3, width, height))], axis=1)

    # Force the Pallas path at this small demo size (the default would take the
    # XLA fallback because launch overhead dominates below ~256 KiB of output).
    out = concated_gradient_forward(x, location_encode, location_bias,
                                    min_pallas_out_bytes=0)
    out = jax.block_until_ready(out)
    assert out.shape == (N, C + 3, width, height)
    assert jnp.allclose(out, ref, atol=1e-6), "mismatch vs reference (single block)"

    # Exercise the batch-blocked grid with a ragged last block (N not % block).
    N2 = 20
    x2 = jax.random.normal(jax.random.PRNGKey(1), (N2, C, width, height), jnp.float32)
    out2 = jax.block_until_ready(
        concated_gradient_forward(x2, location_encode, location_bias,
                                  min_pallas_out_bytes=0, batch_block=8))
    ref2 = jnp.concatenate(
        [x2, jnp.broadcast_to(scaled[None], (N2, 3, width, height))], axis=1)
    assert jnp.allclose(out2, ref2, atol=1e-6), "mismatch vs reference (ragged blocks)"

    # Default call (small-size XLA fallback) must match too.
    out3 = jax.block_until_ready(
        concated_gradient_forward(x, location_encode, location_bias))
    assert jnp.allclose(out3, ref, atol=1e-6), "mismatch vs reference (fallback)"

    # TODO(synk): set_size() (skimage bicubic resize of locationBias) is a host-side
    # parameter reinit, not part of the forward pass, and is not implemented here.

    print("KERNEL_OK")
</pallas_src>

<mosaic_0001>
module attributes {stable_mosaic.version = 11 : i64} {
  func.func @_concat_kernel(%arg0: i32, %arg1: memref<2x1024xf32, #tpu.memory_space<vmem>>, %arg2: memref<1x768xf32, #tpu.memory_space<vmem>>, %arg3: memref<2x1792xf32, #tpu.memory_space<vmem>>) attributes {dimension_semantics = [#tpu.dimension_semantics<parallel>], iteration_bounds = array<i64: 1>, scalar_prefetch = 0 : i64, scratch_operands = 0 : i64, tpu.core_type = #tpu.core_type<tc>, window_params = [{transform_indices = @transform_0, window_bounds = array<i64: 2, 1024>}, {pipeline_mode = #tpu.pipeline_mode<synchronous>, transform_indices = @transform_1, window_bounds = array<i64: 1, 768>}, {transform_indices = @transform_2, window_bounds = array<i64: 2, 1792>}]} {
    %c0 = arith.constant 0 : index
    %c0_0 = arith.constant 0 : index
    %0 = vector.load %arg1[%c0, %c0_0] : memref<2x1024xf32, #tpu.memory_space<vmem>>, vector<2x1024xf32>
    %c0_1 = arith.constant 0 : index
    %c0_2 = arith.constant 0 : index
    %1 = vector.load %arg3[%c0_1, %c0_2] : memref<2x1792xf32, #tpu.memory_space<vmem>>, vector<2x1024xf32>
    tpu.vector_store %arg3[%c0_1, %c0_2], %0 {strides = array<i32>} : memref<2x1792xf32, #tpu.memory_space<vmem>>, vector<2x1024xf32>,
    %c0_3 = arith.constant 0 : index
    %c0_4 = arith.constant 0 : index
    %2 = vector.load %arg2[%c0_3, %c0_4] : memref<1x768xf32, #tpu.memory_space<vmem>>, vector<1x768xf32>
    %3 = vector.shape_cast %2 : vector<1x768xf32> to vector<1x768xf32>
    %4 = vector.broadcast %3 : vector<1x768xf32> to vector<2x768xf32>
    %c0_5 = arith.constant 0 : index
    %c1024 = arith.constant 1024 : index
    %5 = vector.load %arg3[%c0_5, %c1024] : memref<2x1792xf32, #tpu.memory_space<vmem>>, vector<2x768xf32>
    tpu.vector_store %arg3[%c0_5, %c1024], %4 {strides = array<i32>} : memref<2x1792xf32, #tpu.memory_space<vmem>>, vector<2x768xf32>,
    return
  }
  func.func @transform_0(%arg0: i32) -> (i32, i32) {
    %c0_i32 = arith.constant 0 : i32
    %c0_i32_0 = arith.constant 0 : i32
    return %arg0, %c0_i32 : i32, i32
  }
  func.func @transform_1(%arg0: i32) -> (i32, i32) {
    %c0_i32 = arith.constant 0 : i32
    %c0_i32_0 = arith.constant 0 : i32
    %c0_i32_1 = arith.constant 0 : i32
    return %c0_i32, %c0_i32_0 : i32, i32
  }
  func.func @transform_2(%arg0: i32) -> (i32, i32) {
    %c0_i32 = arith.constant 0 : i32
    %c0_i32_0 = arith.constant 0 : i32
    return %arg0, %c0_i32 : i32, i32
  }
}

</mosaic_0001>

<bundles_post_ra>
// kernel: tpu_custom_call.1
= control target key start
LH: loop header
LB: loop body
LE: loop exit
PB: predicated region body
PF: predicated region fallthrough
CT: control target
= control target key end

     0   :  { %7 = vsyncpa [#allocation3], 0  ;;  %s243_s0 = inlined_call_operand.hbm [shape: f32[2,1024], index: 0, kind: input, shape index: {}]   ;;  %s244_s1 = inlined_call_operand.hbm [shape: f32[1,768], index: 1, kind: input, shape index: {}]   ;;  %s245_s2 = inlined_call_operand.hbm [shape: f32[2,1792], index: 2, kind: output, shape index: {}]  }
   0x1   :  { %8 = vsyncpa [#allocation6], 0 }
   0x2   :  { %9 = vsyncpa [#allocation4], 0  ;;  %s188_s9 = smov [#allocation2]   ;;  %s189_s11 = smov [#allocation5]  }
   0x3   :  { %s16_s10 = sshll.u32 %s188_s9, 4  ;;  %s26_s12 = sshll.u32 %s189_s11, 4  ;;  %s17_s10 = int_to_ptr.vmem [resolvable:$true] %s16_s10  ;;  %s27_s12 = int_to_ptr.vmem [resolvable:$true] %s26_s12 }
   0x4   :  { %s116_s15 = scalar_lea.hbm %s243_s0, 256 }
   0x5   :  { %p117_p0 = scmp.ne.s32.totalorder %s243_s0, %s116_s15  ;;  %p120_p1 = scmp.lt.u32.totalorder %s116_s15, %s243_s0 }
   0x7   :  { %p122_p2 = pnand %p120_p1, %p117_p0 }
   0x9   :  { %125 = shalt.err (!%p122_p2)
}
   0xa   :  { %s126_s20 = scalar_lea.vmem %s17_s10, 256  ;;  %p131_p4 = scmp.lt.s32.totalorder %s17_s10, %s17_s10 }
   0xb   :  { %p127_p3 = scmp.ne.s32.totalorder %s17_s10, %s126_s20  ;;  %p132_p5 = scmp.lt.s32.totalorder %s126_s20, %s126_s20 }
   0xd   :  { %p133_p6 = por %p132_p5, %p131_p4 }
   0xf   :  { %p134_p7 = pnand %p133_p6, %p127_p3 }
  0x11   :  { %137 = shalt.err (!%p134_p7)
}
  0x12   :  { %19 = dma.hbm_to_vmem [thread:$0]  %s243_s0, 256, %s17_s10, [#allocation3]  }
  0x13   :  { %s138_s25 = scalar_lea.hbm %s244_s1, 96 }
  0x14   :  { %p139_p8 = scmp.ne.s32.totalorder %s244_s1, %s138_s25  ;;  %p142_p9 = scmp.lt.u32.totalorder %s138_s25, %s244_s1 }
  0x16   :  { %p144_p10 = pnand %p142_p9, %p139_p8 }
  0x18   :  { %147 = shalt.err (!%p144_p10)
}
  0x19   :  { %s148_s30 = scalar_lea.vmem %s27_s12, 96  ;;  %p153_p12 = scmp.lt.s32.totalorder %s27_s12, %s27_s12 }
  0x1a   :  { %p149_p11 = scmp.ne.s32.totalorder %s27_s12, %s148_s30  ;;  %p154_p13 = scmp.lt.s32.totalorder %s148_s30, %s148_s30 }
  0x1c   :  { %p155_p0 = por %p154_p13, %p153_p12 }
  0x1e   :  { %p156_p1 = pnand %p155_p0, %p149_p11 }
  0x20   :  { %159 = shalt.err (!%p156_p1)
}
  0x21   :  { %29 = dma.hbm_to_vmem [thread:$0]  %s244_s1, 96, %s27_s12, [#allocation6]  }
  0x22   :  { %182 = dma.done.wait [#allocation3], 256  }
  0x23   :  { %183 = vsyncadd [#allocation3], 4294967040 }
  0x24   :  { %184 = dma.done.wait [#allocation6], 96  }
  0x25   :  { %185 = vsyncadd [#allocation6], 4294967200  ;;  %v42_v0 = vlaneseq  ;;  %v190_v1 = vmov 1983009808   ;;  %v36_v11 = vld [vmem:[#allocation2] sm:$0xff]  ;;  %v37_v12 = vld [vmem:[#allocation2 + $0x8] sm:$0xff] }
  0x26   :  { %v69_v2 = vunpack.c.l.s4 %v190_v1  ;;  %v40_v13 = vld [vmem:[#allocation5] sm:$0x3f]  ;;  %38 = vst [vmem:[#allocation7] sm:$0xff] %v36_v11  ;;  %39 = vst [vmem:[#allocation7 + $0x8] sm:$0xff] %v37_v12  ;;  %s191_s1 = smov [#allocation7]  }
  0x27   :  { %v43_v3 = vshrl.u32 %v42_v0, 7  ;;  %s101_s4 = sshll.u32 %s191_s1, 4  ;;  %s102_s4 = int_to_ptr.vmem [resolvable:$true] %s101_s4 }
  0x28   :  { %v70_v4 = vunpack.c.0.s8 %v69_v2  ;;  %s160_s5 = scalar_lea.vmem %s102_s4, 448  ;;  %p165_p3 = scmp.lt.s32.totalorder %s102_s4, %s102_s4 }
  0x29   :  { %v44_v5 = vsub.s32 0, %v43_v3  ;;  %v48_v6 = vsub.s32 1, %v43_v3  ;;  %v52_v7 = vsub.s32 2, %v43_v3  ;;  %v56_v8 = vsub.s32 3, %v43_v3  ;;  %p161_p2 = scmp.ne.s32.totalorder %s102_s4, %s160_s5  ;;  %p166_p4 = scmp.lt.s32.totalorder %s160_s5, %s160_s5 }
  0x2a   :  { %v60_v9 = vsub.s32 4, %v43_v3  ;;  %v64_v10 = vsub.s32 5, %v43_v3  ;;  %v73_v14 = vsub.s32 %v70_v4, %v43_v3 }
  0x2b   :  { %v45_v15 = vrot.slane %v40_v13, %v44_v5  ;;  %v49_v16 = vrot.slane %v40_v13, %v48_v6  ;;  %v53_v17 = vrot.slane %v40_v13, %v52_v7  ;;  %v57_v18 = vrot.slane %v40_v13, %v56_v8  ;;  %p167_p5 = por %p166_p4, %p165_p3 }
  0x2c   :  { %v61_v19 = vrot.slane %v40_v13, %v60_v9  ;;  %v65_v20 = vrot.slane %v40_v13, %v64_v10 }
  0x2d   :  { %v66_v21 = vcombine.low %v45_v15, %v49_v16  ;;  %v67_v22 = vcombine.low %v53_v17, %v57_v18  ;;  %p168_p6 = pnand %p167_p5, %p161_p2 }
  0x2e   :  { %v83_v23 = vcombine.low %v61_v19, %v65_v20 }
  0x2f   :  { %v74_v24 = vrot.slane %v66_v21, %v73_v14  ;;  %v81_v25 = vrot.slane %v67_v22, %v73_v14 }
  0x30   :  { %111 = vst.sshfl [vmem:[#allocation7 + $0x18] sm:$0x33 pattern:$0x76325410] %v83_v23 }
  0x31   :  { %v82_v26 = vcombine.low %v74_v24, %v81_v25 }
  0x33   :  { %93 = vst [vmem:[#allocation7 + $0x10] sm:$0xff] %v82_v26 }
  0x34   :  { %171 = shalt.err (!%p168_p6)
}
  0x35   :  { %s172_s8 = scalar_lea.hbm %s245_s2, 448 }
  0x36   :  { %p173_p7 = scmp.ne.s32.totalorder %s245_s2, %s172_s8  ;;  %p176_p8 = scmp.lt.u32.totalorder %s172_s8, %s245_s2 }
  0x38   :  { %p178_p9 = pnand %p176_p8, %p173_p7 }
  0x3a   :  { %181 = shalt.err (!%p178_p9)
}
  0x3b   :  { %104 = dma.vmem_to_hbm [thread:$0]  %s102_s4, 448, %s245_s2, [#allocation4]  }
  0x3c   :  { %186 = dma.done.wait [#allocation4], 448  }
  0x3d   :  { %187 = vsyncadd [#allocation4], 4294966848 }
  0x3e   :  { %108 = vsyncpa [#allocation3], 1 }
  0x3f   :  { %109 = vsyncpa [#allocation6], 1 }
  0x40   :  { %110 = vsyncpa [#allocation4], 1 }

</bundles_post_ra>
